<compile_context>
chip_gen: v7x
topology: tpu7x:2x2x1
jax: 0.10.0
libtpu: 0.0.40
codegen_flags: <defaults>
</compile_context>

<pallas_src>
import functools

import jax
import jax.numpy as jnp
from jax.experimental import pallas as pl
from jax.experimental.pallas import tpu as pltpu


def _ce_label_smooth_kernel(x_ref, t_ref, o_ref, m_sc, l_sc, ws_sc, *,
                            eps, num_classes, tile_c, n_rows, tile_n):
    i = pl.program_id(0)           # batch-tile index (parallel)
    k = pl.program_id(1)           # class-tile index (arbitrary, innermost)
    n_k = pl.num_programs(1)

    @pl.when(k == 0)
    def _init():
        m_sc[...] = jnp.full(m_sc.shape, -jnp.inf, dtype=jnp.float32)
        l_sc[...] = jnp.zeros_like(l_sc)
        ws_sc[...] = jnp.zeros_like(ws_sc)

    x = x_ref[...].astype(jnp.float32)        # (tile_n, tile_c) upcast on-chip
    t = t_ref[...]                            # (tile_n, 1) int32 targets

    c_f = float(num_classes)
    w_hit = (1.0 - eps) + eps / c_f
    w_miss = eps / c_f

    gcol = k * tile_c + jax.lax.broadcasted_iota(jnp.int32, (tile_n, tile_c), 1)
    w = jnp.where(gcol == t, w_hit, w_miss)
    if num_classes % tile_c != 0:
        # Static (trace-time) decision: only pay per-element column masking when
        # the last class tile is partial.  Finite sentinel avoids 0 * (-inf) NaNs.
        valid = gcol < num_classes
        w = jnp.where(valid, w, 0.0)
        x = jnp.where(valid, x, -1e30)

    # Online log-sum-exp over class tiles (running max m, rescaled exp-sum l),
    # plus the running weighted sum ws (needs no rescaling).
    m_old = m_sc[...]
    m_new = jnp.maximum(m_old, jnp.max(x, axis=1, keepdims=True))
    alpha = jnp.exp(m_old - m_new)
    l_sc[...] = alpha * l_sc[...] + jnp.sum(jnp.exp(x - m_new), axis=1, keepdims=True)
    ws_sc[...] = ws_sc[...] + jnp.sum(w * x, axis=1, keepdims=True)
    m_sc[...] = m_new

    @pl.when(k == n_k - 1)
    def _finalize():
        # loss_i = m_i + log(l_i) - sum_j w_ij x_ij   (uses sum_j w_ij == 1)
        loss_rows = m_sc[...] + jnp.log(l_sc[...]) - ws_sc[...]
        # Rows past the true batch hold uninitialized data; every op above was
        # strictly per-row, so masking here (before the only cross-row sum) is safe.
        rows = i * tile_n + jax.lax.broadcasted_iota(jnp.int32, (tile_n, 1), 0)
        loss_rows = jnp.where(rows < n_rows, loss_rows, 0.0)
        partial = jnp.sum(loss_rows)
        # Lane-dense (8,128) output slab; partial lives in [0, 0, 0], zeros elsewhere,
        # so the wrapper can do one contiguous jnp.sum over all partials.
        rr = jax.lax.broadcasted_iota(jnp.int32, o_ref.shape, 1)
        cc = jax.lax.broadcasted_iota(jnp.int32, o_ref.shape, 2)
        o_ref[...] = jnp.where((rr == 0) & (cc == 0), partial, 0.0)


def _vmem_budget():
    """(vmem_limit_bytes, per-grid-step working budget) derived from the chip."""
    cap = 64 * 1024 * 1024  # conservative fallback = v7x physical VMEM
    try:
        info = pltpu.get_tpu_info()
        got = int(getattr(info, "vmem_capacity_bytes", 0) or 0)
        if got > 0:
            cap = got
    except Exception:
        pass
    # ~70% of physical with a hard 96 MiB cap:
    #   v7x (64 MiB phys)  -> ~45 MiB scoped limit
    #   v5e/v6e (128 MiB)  -> ~90 MiB scoped limit
    vmem_limit = min(int(cap * 0.7), 96 * 1024 * 1024)
    budget = int(vmem_limit * 0.6)          # headroom for compiler scratch / spills
    return vmem_limit, budget


def _pick_tiles(n, c, itemsize, budget_bytes, max_class_tile=2048):
    # Class tile: whole class axis if it is modest, else a lane-aligned strip
    # (online LSE in the kernel makes VMEM independent of C).
    if c <= max_class_tile:
        tile_c = c
    else:
        tile_c = (max_class_tile // 128) * 128

    # Per-row VMEM bytes (the real working set, not just native input bytes):
    #   2 x double-buffered native logits block : 2 * tile_c * itemsize
    #   ~4 x f32 working set (x, exp, w, iota)  : 4 * tile_c * 4
    #   2 x lane-padded (.,128) int32 targets   : 2 * 512
    #   3 x lane-padded (.,128) f32 scratch     : 3 * 512
    per_row = tile_c * (2 * itemsize + 16) + 5 * 512
    tile_n = max(1, budget_bytes // per_row)

    # Keep >=2 batch tiles when possible so both v7x TensorCores get work.
    half = ((-(-n // 2)) + 7) // 8 * 8      # roundup8(cdiv(n, 2))
    tile_n = min(tile_n, half, 4096)
    tile_n = max(8, (tile_n // 8) * 8)      # sublane-aligned
    return tile_n, tile_c


def cross_entropy_label_smooth(inputs, targets, *, num_classes, epsilon,
                               max_class_tile=2048):
    """inputs: (N, C) logits (any float dtype); targets: (N,) int class ids -> scalar f32."""
    n, c = inputs.shape
    assert c == num_classes
    t2d = targets.reshape(n, 1).astype(jnp.int32)

    vmem_limit, budget = _vmem_budget()
    tile_n, tile_c = _pick_tiles(n, c, inputs.dtype.itemsize, budget, max_class_tile)
    num_row_tiles = pl.cdiv(n, tile_n)
    num_class_tiles = pl.cdiv(c, tile_c)

    kernel = functools.partial(
        _ce_label_smooth_kernel,
        eps=float(epsilon), num_classes=c, tile_c=tile_c, n_rows=n, tile_n=tile_n,
    )

    cost = pl.CostEstimate(
        flops=6 * n * c,
        transcendentals=n * c,
        bytes_accessed=(n * c * inputs.dtype.itemsize
                        + n * 4 * num_class_tiles
                        + num_row_tiles * 8 * 128 * 4),
    )

    partials = pl.pallas_call(
        kernel,
        out_shape=jax.ShapeDtypeStruct((num_row_tiles, 8, 128), jnp.float32),
        grid=(num_row_tiles, num_class_tiles),
        in_specs=[
            pl.BlockSpec((tile_n, tile_c), lambda i, k: (i, k)),
            pl.BlockSpec((tile_n, 1), lambda i, k: (i, 0)),
        ],
        out_specs=pl.BlockSpec((1, 8, 128), lambda i, k: (i, 0, 0)),
        scratch_shapes=[
            pltpu.VMEM((tile_n, 1), jnp.float32),   # running max m
            pltpu.VMEM((tile_n, 1), jnp.float32),   # running exp-sum l
            pltpu.VMEM((tile_n, 1), jnp.float32),   # running weighted sum ws
        ],
        compiler_params=pltpu.CompilerParams(
            dimension_semantics=("parallel", "arbitrary"),
            vmem_limit_bytes=vmem_limit,
        ),
        cost_estimate=cost,
    )(inputs, t2d)

    return jnp.sum(partials) / n


def _reference(inputs, targets, num_classes, epsilon):
    log_probs = jax.nn.log_softmax(inputs.astype(jnp.float32), axis=1)
    onehot = jax.nn.one_hot(targets, num_classes, dtype=jnp.float32)
    smooth = (1.0 - epsilon) * onehot + epsilon / num_classes
    return (-smooth * log_probs).mean(0).sum()


if __name__ == "__main__":
    epsilon = 0.1
    key = jax.random.PRNGKey(0)
    k1, k2, k3, k4, k5, k6, k7, k8 = jax.random.split(key, 8)

    # --- check 1: f32 logits, single class tile, batch divisible by tile ----
    C1, N1 = 128, 8
    x1 = jax.random.normal(k1, (N1, C1), dtype=jnp.float32)
    t1 = jax.random.randint(k2, (N1,), 0, C1, dtype=jnp.int32)
    got = jax.block_until_ready(
        cross_entropy_label_smooth(x1, t1, num_classes=C1, epsilon=epsilon))
    ref = _reference(x1, t1, C1, epsilon)
    assert jnp.allclose(got, ref, rtol=2e-5, atol=2e-5), (got, ref)

    # --- check 2: bf16 logits, row-remainder masking, >=2 batch tiles -------
    C2, N2 = 128, 12
    x2 = jax.random.normal(k3, (N2, C2), dtype=jnp.bfloat16)
    t2 = jax.random.randint(k4, (N2,), 0, C2, dtype=jnp.int32)
    got2 = jax.block_until_ready(
        cross_entropy_label_smooth(x2, t2, num_classes=C2, epsilon=epsilon))
    ref2 = _reference(x2, t2, C2, epsilon)
    assert jnp.allclose(got2, ref2, rtol=1e-4, atol=1e-4), (got2, ref2)

    # --- check 3: class-tiled online-LSE path (C divisible by class tile) ---
    C3, N3 = 384, 16
    x3 = jax.random.normal(k5, (N3, C3), dtype=jnp.float32)
    t3 = jax.random.randint(k6, (N3,), 0, C3, dtype=jnp.int32)
    got3 = jax.block_until_ready(
        cross_entropy_label_smooth(x3, t3, num_classes=C3, epsilon=epsilon,
                                   max_class_tile=128))
    ref3 = _reference(x3, t3, C3, epsilon)
    assert jnp.allclose(got3, ref3, rtol=2e-5, atol=2e-5), (got3, ref3)

    # --- check 4: bf16 + class remainder (column masking) + row remainder ---
    C4, N4 = 200, 12
    x4 = jax.random.normal(k7, (N4, C4), dtype=jnp.bfloat16)
    t4 = jax.random.randint(k8, (N4,), 0, C4, dtype=jnp.int32)
    got4 = jax.block_until_ready(
        cross_entropy_label_smooth(x4, t4, num_classes=C4, epsilon=epsilon,
                                   max_class_tile=128))
    ref4 = _reference(x4, t4, C4, epsilon)
    assert jnp.allclose(got4, ref4, rtol=1e-4, atol=1e-4), (got4, ref4)

    print("KERNEL_OK")
</pallas_src>

<mosaic_0001>
module attributes {stable_mosaic.version = 11 : i64} {
  func.func @_ce_label_smooth_kernel(%arg0: i32, %arg1: i32, %arg2: memref<8x128xf32, #tpu.memory_space<vmem>>, %arg3: memref<8x1xi32, #tpu.memory_space<vmem>>, %arg4: memref<1x8x128xf32, #tpu.memory_space<vmem>>, %arg5: memref<8x1xf32, #tpu.memory_space<vmem>>, %arg6: memref<8x1xf32, #tpu.memory_space<vmem>>, %arg7: memref<8x1xf32, #tpu.memory_space<vmem>>) attributes {dimension_semantics = [#tpu.dimension_semantics<parallel>, #tpu.dimension_semantics<arbitrary>], iteration_bounds = array<i64: 1, 1>, scalar_prefetch = 0 : i64, scratch_operands = 3 : i64, tpu.core_type = #tpu.core_type<tc>, window_params = [{transform_indices = @transform_0, window_bounds = array<i64: 8, 128>}, {transform_indices = @transform_1, window_bounds = array<i64: 8, 1>}, {transform_indices = @transform_2, window_bounds = array<i64: 1, 8, 128>}]} {
    %c0_i32 = arith.constant 0 : i32
    %0 = arith.cmpi eq, %arg1, %c0_i32 : i32
    %1 = arith.extui %0 : i1 to i32
    %c0_i32_0 = arith.constant 0 : i32
    %2 = arith.cmpi ne, %1, %c0_i32_0 : i32
    scf.if %2 {
      %cst_22 = arith.constant 0xFF800000 : f32
      %39 = vector.broadcast %cst_22 : f32 to vector<8x1xf32>
      %c0_23 = arith.constant 0 : index
      %c0_24 = arith.constant 0 : index
      %40 = vector.load %arg5[%c0_23, %c0_24] : memref<8x1xf32, #tpu.memory_space<vmem>>, vector<8x1xf32>
      tpu.vector_store %arg5[%c0_23, %c0_24], %39 {strides = array<i32>} : memref<8x1xf32, #tpu.memory_space<vmem>>, vector<8x1xf32>,
      %cst_25 = arith.constant 0.000000e+00 : f32
      %41 = vector.broadcast %cst_25 : f32 to vector<8x1xf32>
      %c0_26 = arith.constant 0 : index
      %c0_27 = arith.constant 0 : index
      %42 = vector.load %arg6[%c0_26, %c0_27] : memref<8x1xf32, #tpu.memory_space<vmem>>, vector<8x1xf32>
      tpu.vector_store %arg6[%c0_26, %c0_27], %41 {strides = array<i32>} : memref<8x1xf32, #tpu.memory_space<vmem>>, vector<8x1xf32>,
      %cst_28 = arith.constant 0.000000e+00 : f32
      %43 = vector.broadcast %cst_28 : f32 to vector<8x1xf32>
      %c0_29 = arith.constant 0 : index
      %c0_30 = arith.constant 0 : index
      %44 = vector.load %arg7[%c0_29, %c0_30] : memref<8x1xf32, #tpu.memory_space<vmem>>, vector<8x1xf32>
      tpu.vector_store %arg7[%c0_29, %c0_30], %43 {strides = array<i32>} : memref<8x1xf32, #tpu.memory_space<vmem>>, vector<8x1xf32>,
    } else {
    }
    %c0 = arith.constant 0 : index
    %c0_1 = arith.constant 0 : index
    %3 = vector.load %arg2[%c0, %c0_1] : memref<8x128xf32, #tpu.memory_space<vmem>>, vector<8x128xf32>
    %c0_2 = arith.constant 0 : index
    %c0_3 = arith.constant 0 : index
    %4 = vector.load %arg3[%c0_2, %c0_3] : memref<8x1xi32, #tpu.memory_space<vmem>>, vector<8x1xi32>
    %c128_i32 = arith.constant 128 : i32
    %5 = arith.muli %arg1, %c128_i32 : i32
    %6 = tpu.iota {dimensions = array<i32: 1>} : vector<8x128xi32>
    %7 = vector.broadcast %5 : i32 to vector<8x128xi32>
    %8 = arith.addi %7, %6 : vector<8x128xi32>
    %9 = vector.broadcast %4 : vector<8x1xi32> to vector<8x128xi32>
    %10 = arith.cmpi eq, %8, %9 : vector<8x128xi32>
    %cst = arith.constant 0.900781273 : f32
    %cst_4 = arith.constant 7.812500e-04 : f32
    %11 = vector.broadcast %cst : f32 to vector<8x128xf32>
    %12 = vector.broadcast %cst_4 : f32 to vector<8x128xf32>
    %13 = arith.select %10, %11, %12 : vector<8x128xi1>, vector<8x128xf32>
    %c0_5 = arith.constant 0 : index
    %c0_6 = arith.constant 0 : index
    %14 = vector.load %arg5[%c0_5, %c0_6] : memref<8x1xf32, #tpu.memory_space<vmem>>, vector<8x1xf32>
    %cst_7 = arith.constant dense<0xFF800000> : vector<8xf32>
    %15 = vector.multi_reduction <maximumf>, %3, %cst_7 [1] : vector<8x128xf32> to vector<8xf32>
    %16 = vector.shape_cast %15 : vector<8xf32> to vector<8x1xf32>
    %17 = arith.maximumf %14, %16 : vector<8x1xf32>
    %18 = arith.subf %14, %17 : vector<8x1xf32>
    %19 = math.exp %18 : vector<8x1xf32>
    %c0_8 = arith.constant 0 : index
    %c0_9 = arith.constant 0 : index
    %20 = vector.load %arg6[%c0_8, %c0_9] : memref<8x1xf32, #tpu.memory_space<vmem>>, vector<8x1xf32>
    %21 = arith.mulf %19, %20 : vector<8x1xf32>
    %22 = vector.broadcast %17 : vector<8x1xf32> to vector<8x128xf32>
    %23 = arith.subf %3, %22 : vector<8x128xf32>
    %24 = math.exp %23 : vector<8x128xf32>
    %cst_10 = arith.constant dense<0.000000e+00> : vector<8xf32>
    %25 = vector.multi_reduction <add>, %24, %cst_10 [1] : vector<8x128xf32> to vector<8xf32>
    %26 = vector.shape_cast %25 : vector<8xf32> to vector<8x1xf32>
    %27 = arith.addf %21, %26 : vector<8x1xf32>
    %c0_11 = arith.constant 0 : index
    %c0_12 = arith.constant 0 : index
    %28 = vector.load %arg6[%c0_11, %c0_12] : memref<8x1xf32, #tpu.memory_space<vmem>>, vector<8x1xf32>
    tpu.vector_store %arg6[%c0_11, %c0_12], %27 {strides = array<i32>} : memref<8x1xf32, #tpu.memory_space<vmem>>, vector<8x1xf32>,
    %c0_13 = arith.constant 0 : index
    %c0_14 = arith.constant 0 : index
    %29 = vector.load %arg7[%c0_13, %c0_14] : memref<8x1xf32, #tpu.memory_space<vmem>>, vector<8x1xf32>
    %30 = arith.mulf %13, %3 : vector<8x128xf32>
    %cst_15 = arith.constant dense<0.000000e+00> : vector<8xf32>
    %31 = vector.multi_reduction <add>, %30, %cst_15 [1] : vector<8x128xf32> to vector<8xf32>
    %32 = vector.shape_cast %31 : vector<8xf32> to vector<8x1xf32>
    %33 = arith.addf %29, %32 : vector<8x1xf32>
    %c0_16 = arith.constant 0 : index
    %c0_17 = arith.constant 0 : index
    %34 = vector.load %arg7[%c0_16, %c0_17] : memref<8x1xf32, #tpu.memory_space<vmem>>, vector<8x1xf32>
    tpu.vector_store %arg7[%c0_16, %c0_17], %33 {strides = array<i32>} : memref<8x1xf32, #tpu.memory_space<vmem>>, vector<8x1xf32>,
    %c0_18 = arith.constant 0 : index
    %c0_19 = arith.constant 0 : index
    %35 = vector.load %arg5[%c0_18, %c0_19] : memref<8x1xf32, #tpu.memory_space<vmem>>, vector<8x1xf32>
    tpu.vector_store %arg5[%c0_18, %c0_19], %17 {strides = array<i32>} : memref<8x1xf32, #tpu.memory_space<vmem>>, vector<8x1xf32>,
    %c0_i32_20 = arith.constant 0 : i32
    %36 = arith.cmpi eq, %arg1, %c0_i32_20 : i32
    %37 = arith.extui %36 : i1 to i32
    %c0_i32_21 = arith.constant 0 : i32
    %38 = arith.cmpi ne, %37, %c0_i32_21 : i32
    scf.if %38 {
      %c0_22 = arith.constant 0 : index
      %c0_23 = arith.constant 0 : index
      %39 = vector.load %arg5[%c0_22, %c0_23] : memref<8x1xf32, #tpu.memory_space<vmem>>, vector<8x1xf32>
      %c0_24 = arith.constant 0 : index
      %c0_25 = arith.constant 0 : index
      %40 = vector.load %arg6[%c0_24, %c0_25] : memref<8x1xf32, #tpu.memory_space<vmem>>, vector<8x1xf32>
      %41 = math.log %40 : vector<8x1xf32>
      %42 = arith.addf %39, %41 : vector<8x1xf32>
      %c0_26 = arith.constant 0 : index
      %c0_27 = arith.constant 0 : index
      %43 = vector.load %arg7[%c0_26, %c0_27] : memref<8x1xf32, #tpu.memory_space<vmem>>, vector<8x1xf32>
      %44 = arith.subf %42, %43 : vector<8x1xf32>
      %c8_i32 = arith.constant 8 : i32
      %45 = arith.muli %arg0, %c8_i32 : i32
      %46 = tpu.iota {dimensions = array<i32: 0>} : vector<8x1xi32>
      %47 = vector.broadcast %45 : i32 to vector<8x1xi32>
      %48 = arith.addi %47, %46 : vector<8x1xi32>
      %c8_i32_28 = arith.constant 8 : i32
      %49 = vector.broadcast %c8_i32_28 : i32 to vector<8x1xi32>
      %50 = arith.cmpi slt, %48, %49 : vector<8x1xi32>
      %cst_29 = arith.constant 0.000000e+00 : f32
      %51 = vector.broadcast %cst_29 : f32 to vector<8x1xf32>
      %52 = arith.select %50, %44, %51 : vector<8x1xi1>, vector<8x1xf32>
      %53 = vector.shape_cast %52 : vector<8x1xf32> to vector<1x8x1xf32>
      %cst_30 = arith.constant dense<0.000000e+00> : vector<1xf32>
      %54 = vector.multi_reduction <add>, %53, %cst_30 [1, 2] : vector<1x8x1xf32> to vector<1xf32>
      %55 = vector.shape_cast %54 : vector<1xf32> to vector<1x1x1xf32>
      %56 = vector.extract %55[0, 0, 0] : f32 from vector<1x1x1xf32>
      %57 = tpu.iota {dimensions = array<i32: 1>} : vector<1x8x128xi32>
      %58 = tpu.iota {dimensions = array<i32: 2>} : vector<1x8x128xi32>
      %c0_i32_31 = arith.constant 0 : i32
      %59 = vector.broadcast %c0_i32_31 : i32 to vector<1x8x128xi32>
      %60 = arith.cmpi eq, %57, %59 : vector<1x8x128xi32>
      %c0_i32_32 = arith.constant 0 : i32
      %61 = vector.broadcast %c0_i32_32 : i32 to vector<1x8x128xi32>
      %62 = arith.cmpi eq, %58, %61 : vector<1x8x128xi32>
      %63 = arith.andi %60, %62 : vector<1x8x128xi1>
      %cst_33 = arith.constant 0.000000e+00 : f32
      %64 = vector.broadcast %56 : f32 to vector<1x8x128xf32>
      %65 = vector.broadcast %cst_33 : f32 to vector<1x8x128xf32>
      %66 = arith.select %63, %64, %65 : vector<1x8x128xi1>, vector<1x8x128xf32>
      %c0_34 = arith.constant 0 : index
      %c0_35 = arith.constant 0 : index
      %c0_36 = arith.constant 0 : index
      %67 = vector.load %arg4[%c0_34, %c0_35, %c0_36] : memref<1x8x128xf32, #tpu.memory_space<vmem>>, vector<1x8x128xf32>
      tpu.vector_store %arg4[%c0_34, %c0_35, %c0_36], %66 {strides = array<i32>} : memref<1x8x128xf32, #tpu.memory_space<vmem>>, vector<1x8x128xf32>,
    } else {
    }
    return
  }
  func.func @transform_0(%arg0: i32, %arg1: i32) -> (i32, i32) {
    %c0_i32 = arith.constant 0 : i32
    return %arg0, %arg1 : i32, i32
  }
  func.func @transform_1(%arg0: i32, %arg1: i32) -> (i32, i32) {
    %c0_i32 = arith.constant 0 : i32
    %c0_i32_0 = arith.constant 0 : i32
    return %arg0, %c0_i32 : i32, i32
  }
  func.func @transform_2(%arg0: i32, %arg1: i32) -> (i32, i32, i32) {
    %c0_i32 = arith.constant 0 : i32
    %c0_i32_0 = arith.constant 0 : i32
    %c0_i32_1 = arith.constant 0 : i32
    return %arg0, %c0_i32, %c0_i32_0 : i32, i32, i32
  }
}

</mosaic_0001>

<bundles_post_ra>
// kernel: tpu_custom_call.1
= control target key start
LH: loop header
LB: loop body
LE: loop exit
PB: predicated region body
PF: predicated region fallthrough
CT: control target
= control target key end

     0   :  { %s192_s0 = inlined_call_operand.vmem [shape: f32[8,128], index: 0, kind: input, shape index: {}]   ;;  %s193_s1 = inlined_call_operand.vmem [shape: s32[8,1], index: 1, kind: input, shape index: {}]   ;;  %s194_s2 = inlined_call_operand.hbm [shape: f32[1,8,128], index: 2, kind: output, shape index: {}]  }
   0x1   :  { %v20_v0 = vld [vmem:[%s192_s0] sm:$0xff] }
   0x2   :  { %7 = vsyncpa [#allocation6], 0  ;;  %33 = vmax.xlane.f32.xlu0 %v20_v0  ;;  %vm16_vm0 = vcmask 7168   ;;  %v147_v1 = vmov -inf   ;;  %v148_v2 = vmov 0   ;;  %v21_v3 = vld [vmem:[%s193_s1] sm:$0xff]  ;;  %v23_v11 = vlaneseq }
   0x3   :  { %17 = vst.msk [vmem:[#allocation2] sm:$0xff] %vm16_vm0, %v147_v1  ;;  %115 = vset.pattern.permute.xlu0 %v148_v2  ;;  %116 = vset.pattern.permute.xlu1 %v148_v2  ;;  %v149_v4 = vmov 0.0   ;;  %v150_v15 = vmov 0.00078125   ;;  %s151_s0 = smov [#allocation5]  }
   0x4   :  { %28 = vperm.xlu1 %116, %v21_v3   ;;  %18 = vst.msk [vmem:[#allocation3] sm:$0xff] %vm16_vm0, %v149_v4  ;;  %19 = vst.msk [vmem:[#allocation4] sm:$0xff] %vm16_vm0, %v149_v4  ;;  %v24_v13 = vand.u32 127, %v23_v11  ;;  %v73_v43 = vshrl.u32 %v23_v11, 7  ;;  %s100_s1 = sshll.u32 %s151_s0, 4  ;;  %s101_s1 = int_to_ptr.vmem [resolvable:$true] %s100_s1 }
   0x5   :  { %s123_s14 = scalar_lea.vmem %s101_s1, 128  ;;  %p128_p1 = scmp.lt.s32.totalorder %s101_s1, %s101_s1 }
   0x6   :  { %vm88_vm2 = vcmp.eq.s32.totalorder %v73_v43, 0  ;;  %vm89_vm3 = vcmp.eq.s32.totalorder %v24_v13, 0  ;;  %p124_p0 = scmp.ne.s32.totalorder %s101_s1, %s123_s14  ;;  %p129_p2 = scmp.lt.s32.totalorder %s123_s14, %s123_s14 }
   0x7   :  { %vm90_vm4 = vmand %vm88_vm2, %vm89_vm3 }
   0x8   :  { %p130_p3 = por %p129_p2, %p128_p1 }
   0xa   :  { %v32_v5 = vld [vmem:[#allocation2] sm:$0xff]  ;;  %p131_p4 = pnand %p130_p3, %p124_p0 }
   0xb   :  { %v39_v21 = vld [vmem:[#allocation3] sm:$0xff]  ;;  %v54_v25 = vld [vmem:[#allocation4] sm:$0xff] }
  0x83   :  { %v29_v14 = vpop.permute.xlu1 %28 }
  0x84   :  { %vm30_vm1 = vcmp.eq.s32.totalorder %v24_v13, %v29_v14 }
  0x85   :  { %v31_v16 = vsel %vm30_vm1, 0.9007813, %v150_v15 }
  0x86   :  { %v55_v18 = vmul.f32 %v31_v16, %v20_v0 }
  0x8f   :  { %v34_v6 = vpop.xlane.xlu0 %33 }
  0x90   :  { %v35_v7 = vmax.f32 %v32_v5, %v34_v6 }
  0x92   :  { %v36_v8 = vsub.f32 %v32_v5, %v35_v7  ;;  %60 = vst.msk [vmem:[#allocation2] sm:$0xff] %vm16_vm0, %v35_v7  ;;  %43 = vperm.xlu0 %115, %v35_v7  }
  0x94   :  { %v37_v19 = vmul.f32 1.442695, %v36_v8 }
  0x99   :  { %v64_v31 = vld [vmem:[#allocation2] sm:$0xff] }
 0x111   :  { %v44_v9 = vpop.permute.xlu0 %43 }
 0x112   :  { %v46_v10 = vsub.f32 %v20_v0, %v44_v9 }
 0x114   :  { %v47_v12 = vmul.f32 1.442695, %v46_v10 }
 0x116   :  { %117 = vpow2.f32 %v47_v12 }
 0x117   :  { %119 = vpow2.f32 %v37_v19 }
 0x120   :  { %v118_v17 = vpop.eup %117 }
 0x121   :  { %49 = vadd.xlane.f32.xlu1 %v118_v17  ;;  %v120_v20 = vpop.eup %119 }
 0x122   :  { %v40_v22 = vmul.f32 %v120_v20, %v39_v21 }
 0x125   :  { %56 = vadd.xlane.f32.xlu1 %v55_v18 }
 0x1ae   :  { %v50_v23 = vpop.xlane.xlu1 %49 }
 0x1af   :  { %v51_v24 = vadd.f32 %v50_v23, %v40_v22 }
 0x1b1   :  { %53 = vst.msk [vmem:[#allocation3] sm:$0xff] %vm16_vm0, %v51_v24 }
 0x1b2   :  { %v57_v26 = vpop.xlane.xlu1 %56 }
 0x1b3   :  { %v58_v27 = vadd.f32 %v57_v26, %v54_v25 }
 0x1b5   :  { %59 = vst.msk [vmem:[#allocation4] sm:$0xff] %vm16_vm0, %v58_v27 }
 0x1b8   :  { %v65_v28 = vld [vmem:[#allocation3] sm:$0xff] }
 0x1b9   :  { %121 = vlog2.f32 %v65_v28 }
 0x1bc   :  { %v69_v32 = vld [vmem:[#allocation4] sm:$0xff] }
 0x1c3   :  { %v122_v29 = vpop.eup %121 }
 0x1c4   :  { %v67_v30 = vmul.f32 0.6931472, %v122_v29 }
 0x1c6   :  { %v68_v33 = vadd.f32 %v67_v30, %v64_v31 }
 0x1c8   :  { %v70_v34 = vsub.f32 %v68_v33, %v69_v32 }
 0x1ca   :  { %v78_v35 = vsel %vm16_vm0, %v70_v34, 0.0 }
 0x1cb   :  { %79 = vadd.xlane.f32.xlu1 %v78_v35 }
 0x258   :  { %v80_v36 = vpop.xlane.xlu1 %79 }
 0x259   :  { %v81_v37 = vrot.slane %v80_v36, 4 }
 0x25b   :  { %v82_v38 = vadd.f32 %v81_v37, %v80_v36 }
 0x25d   :  { %v83_v39 = vrot.slane %v82_v38, 2 }
 0x25f   :  { %v84_v40 = vadd.f32 %v83_v39, %v82_v38 }
 0x261   :  { %v85_v41 = vrot.slane %v84_v40, 1 }
 0x263   :  { %v86_v42 = vadd.f32 %v85_v41, %v84_v40 }
 0x265   :  { %108 = vpush %v86_v42 }
 0x296   :  { %s109_s13 = spop %108 }
 0x297   :  { %v91_v44 = vstv %s109_s13 }
 0x298   :  { %v92_v45 = vsel %vm90_vm4, %v91_v44, 0.0 }
 0x299   :  { %93 = vst [vmem:[#allocation5] sm:$0xff] %v92_v45 }
 0x29a   :  { %134 = shalt.err (!%p131_p4)
}
 0x29b   :  { %s135_s17 = scalar_lea.hbm %s194_s2, 128 }
 0x29c   :  { %p136_p5 = scmp.ne.s32.totalorder %s194_s2, %s135_s17  ;;  %p139_p6 = scmp.lt.u32.totalorder %s135_s17, %s194_s2 }
 0x29e   :  { %p141_p7 = pnand %p139_p6, %p136_p5 }
 0x2a0   :  { %144 = shalt.err (!%p141_p7)
}
 0x2a1   :  { %103 = dma.vmem_to_hbm [thread:$0]  %s101_s1, 128, %s194_s2, [#allocation6]  }
 0x2a2   :  { %145 = dma.done.wait [#allocation6], 128  }
 0x2a3   :  { %146 = vsyncadd [#allocation6], 4294967168 }
 0x2a4   :  { %107 = vsyncpa [#allocation6], 1 }

</bundles_post_ra>
